<compile_context>
chip_gen: v6e
topology: v6e:2x2x1
jax: 0.10.0
libtpu: 0.0.40
codegen_flags: <defaults>
</compile_context>

<pallas_src>
import functools

import jax
import jax.numpy as jnp
from jax import lax
from jax.experimental import pallas as pl
from jax.experimental.pallas import tpu as pltpu


def _round_up(a: int, b: int) -> int:
    return (a + b - 1) // b * b


def _tpu_vmem_capacity_bytes() -> int:
    """Physical VMEM per TensorCore (fallback: v7x-conservative 64 MiB)."""
    try:
        info = pltpu.get_tpu_info()
        v = getattr(info, "vmem_capacity_bytes", None)
        if v:
            return int(v)
    except Exception:
        pass
    return 64 * 1024 * 1024


def _gvp_kernel(inv_n, chunk, w_ref, x_ref, o_ref):
    """One grid step: variance over the reflection-padded map for rb rows.

    w_ref: (HW, 8)  -- column 0 holds the pad-multiplicity weights, cols 1..7 = 0
    x_ref: (rb, HW) -- rb flattened (H*W) spatial slices (one per (n, c))
    o_ref: (rb, 1)  -- per-row sigma
    """
    rb = x_ref.shape[0]
    n_chunks = rb // chunk  # static

    w = w_ref[...]                       # resident small weight (MXU-stationary RHS)
    wf = w.astype(jnp.float32)
    dims = (((1,), (0,)), ((), ()))      # contract HW: (chunk, HW) @ (HW, 8)
    # For f32 operands force full-precision MXU passes (cancellation-sensitive
    # E[x^2]-E[x]^2); bf16 operands are single-pass either way.
    prec_s1 = (lax.Precision.HIGHEST if w.dtype == jnp.float32
               else lax.Precision.DEFAULT)

    def one(row0):
        xin = x_ref[pl.ds(row0, chunk), :]       # (chunk, HW), native dtype
        x_mx = xin.astype(w.dtype)               # bf16 stays bf16 for the mean path
        xf = xin.astype(jnp.float32)             # f32 only for the square path
        s1 = lax.dot_general(x_mx, w, dims, precision=prec_s1,
                             preferred_element_type=jnp.float32)       # (chunk, 8)
        s2 = lax.dot_general(xf * xf, wf, dims, precision=lax.Precision.HIGHEST,
                             preferred_element_type=jnp.float32)       # (chunk, 8)
        # Epilogue on (chunk, 1) only (column 0 carries the real reduction).
        mu = s1[:, 0:1] * inv_n
        sigma = s2[:, 0:1] * inv_n - mu * mu
        o_ref[pl.ds(row0, chunk), :] = sigma.astype(o_ref.dtype)

    if n_chunks == 1:
        one(0)
    else:
        # Row chunking bounds the f32 temporaries (cast + square) to a few
        # hundred KiB while the DMA block stays large (v7x VMEM item).
        def body(c, carry):
            one(pl.multiple_of(c * chunk, chunk))
            return carry

        lax.fori_loop(0, n_chunks, body, 0)


def gvp(x, *, target_block_bytes=None, row_chunk=512, vmem_limit_bytes=None):
    """ReflectionPad2d(1) -> global mean / variance pooling. (N,C,H,W)->(N,C,1,1)."""
    N, C, H, W = x.shape
    if H < 2 or W < 2:
        raise ValueError("ReflectionPad2d(1) requires H >= 2 and W >= 2")
    NC, HW = N * C, H * W

    # Rows = (n, c) pairs, lanes = flattened spatial dim (no-copy reshape).
    x2 = x.reshape(NC, HW)
    itemsize = x2.dtype.itemsize
    packing = max(1, 4 // itemsize)          # 1 f32, 2 bf16, 4 int8/fp8
    row_align = 8 * packing                  # full packed sublanes per vreg

    # Generation-aware sizing: ~4 MiB blocks on v7x-class (64 MiB VMEM),
    # ~8 MiB on v5e/v6e (128 MiB VMEM).  Raise the scoped VMEM limit so the
    # double-buffered block + chunk temporaries fit without shrinking rb.
    vmem_phys = _tpu_vmem_capacity_bytes()
    if target_block_bytes is None:
        target_block_bytes = (4 if vmem_phys <= 64 * 1024 * 1024 else 8) * 1024 * 1024
    if vmem_limit_bytes is None:
        vmem_limit_bytes = min(96 * 1024 * 1024, (vmem_phys * 3) // 4)

    # Fold ReflectionPad2d(1) into a separable element-multiplicity map:
    # sum over the padded (H+2, W+2) map == sum_ij (r_i * c_j) * x[i, j].
    f_dtype = x.dtype if jnp.issubdtype(x.dtype, jnp.floating) else jnp.float32
    rows = jnp.arange(H, dtype=jnp.int32)
    cols = jnp.arange(W, dtype=jnp.int32)
    rw = 1.0 + (rows == 1).astype(jnp.float32) + (rows == H - 2).astype(jnp.float32)
    cw = 1.0 + (cols == 1).astype(jnp.float32) + (cols == W - 2).astype(jnp.float32)
    w_flat = (rw[:, None] * cw[None, :]).reshape(HW)
    # (HW, 8): weights in column 0 -> canonical (m,k)@(k,n) dot with the tiny
    # weight as the MXU-stationary RHS.  Values are 1/2/4/... -> exact in bf16.
    w_t = jnp.zeros((HW, 8), jnp.float32).at[:, 0].set(w_flat).astype(f_dtype)

    inv_n = 1.0 / float((H + 2) * (W + 2))   # mean over the padded map

    # Row-block size: as many rows per grid step as fit the byte budget.
    # TODO(synk): for extremely large H*W (>~1 MiB/row) the HW axis should get
    # its own "arbitrary" grid axis with an accumulator; not needed for IQA maps.
    bytes_per_row = HW * itemsize
    rb = max(row_align,
             (int(target_block_bytes) // bytes_per_row) // row_align * row_align)
    nc_pad = _round_up(NC, row_align)
    # Keep >= 2 grid steps whenever possible so v7x's 2 TensorCores both work.
    if nc_pad >= 2 * row_align:
        rb = min(rb, _round_up((nc_pad + 1) // 2, row_align))
    rb = min(rb, nc_pad)

    # In-kernel chunk: largest multiple of row_align <= row_chunk that divides rb.
    chunk = rb
    if rb > row_chunk:
        m = rb // row_align
        dmax = max(1, row_chunk // row_align)
        d = 1
        for cand in range(min(m, dmax), 0, -1):
            if m % cand == 0:
                d = cand
                break
        chunk = d * row_align

    n_blocks = pl.cdiv(nc_pad, rb)

    cost = pl.CostEstimate(
        flops=int(4 * NC * HW),
        transcendentals=0,
        bytes_accessed=int(NC * HW * itemsize + NC * itemsize
                           + HW * 8 * w_t.dtype.itemsize),
    )

    out = pl.pallas_call(
        functools.partial(_gvp_kernel, inv_n, chunk),
        out_shape=jax.ShapeDtypeStruct((n_blocks * rb, 1), x.dtype),
        grid=(n_blocks,),
        in_specs=[
            # Weights: constant block index -> stays resident in VMEM.
            pl.BlockSpec((HW, 8), lambda i: (0, 0)),
            # rb rows of flattened x per step (ragged tail padded by Pallas;
            # garbage rows are row-independent and dropped by the [:NC] slice).
            pl.BlockSpec((rb, HW), lambda i: (i, 0)),
        ],
        out_specs=pl.BlockSpec((rb, 1), lambda i: (i, 0)),
        compiler_params=pltpu.CompilerParams(
            dimension_semantics=("parallel",),
            vmem_limit_bytes=int(vmem_limit_bytes),
        ),
        cost_estimate=cost,
    )(w_t, x2)

    return out[:NC].reshape(N, C, 1, 1)


def _reference(x):
    xf = x.astype(jnp.float32)
    xp = jnp.pad(xf, ((0, 0), (0, 0), (1, 1), (1, 1)), mode="reflect")
    mu = jnp.mean(xp, axis=(2, 3), keepdims=True)
    return jnp.mean(xp ** 2, axis=(2, 3), keepdims=True) - mu ** 2


if __name__ == "__main__":
    key = jax.random.PRNGKey(0)

    # 1) primary case
    x = jax.random.normal(key, (2, 4, 16, 16), dtype=jnp.float32)
    out = jax.block_until_ready(gvp(x))
    assert out.shape == (2, 4, 1, 1)
    assert jnp.allclose(out, _reference(x), atol=1e-5, rtol=1e-5)

    # 2) multi-block path (several grid steps, resident weight block)
    xb = jax.random.normal(jax.random.PRNGKey(1), (2, 16, 16, 16), jnp.float32)
    outb = jax.block_until_ready(gvp(xb, target_block_bytes=8 * 1024))
    assert outb.shape == (2, 16, 1, 1)
    assert jnp.allclose(outb, _reference(xb), atol=1e-5, rtol=1e-5)

    # 3) ragged row tail (N*C not a multiple of the row block)
    xr = jax.random.normal(jax.random.PRNGKey(2), (2, 5, 8, 16), jnp.float32)
    outr = jax.block_until_ready(gvp(xr, target_block_bytes=4 * 1024))
    assert outr.shape == (2, 5, 1, 1)
    assert jnp.allclose(outr, _reference(xr), atol=1e-5, rtol=1e-5)

    # 4) in-kernel row-chunking (fori_loop) path with multiple grid steps
    xc = jax.random.normal(jax.random.PRNGKey(3), (2, 32, 16, 16), jnp.float32)
    outc = jax.block_until_ready(gvp(xc, target_block_bytes=64 * 1024, row_chunk=8))
    assert outc.shape == (2, 32, 1, 1)
    assert jnp.allclose(outc, _reference(xc), atol=1e-5, rtol=1e-5)

    # 5) bf16 inputs: native-bf16 mean path, f32 square path, bf16 output
    xh = jax.random.normal(jax.random.PRNGKey(4), (2, 8, 16, 16)).astype(jnp.bfloat16)
    outh = jax.block_until_ready(gvp(xh))
    assert outh.shape == (2, 8, 1, 1) and outh.dtype == jnp.bfloat16
    assert jnp.allclose(outh.astype(jnp.float32), _reference(xh), atol=2e-2, rtol=2e-2)

    print("KERNEL_OK")
</pallas_src>

<mosaic_0001>
module attributes {stable_mosaic.version = 11 : i64} {
  func.func @_gvp_kernel(%arg0: i32, %arg1: memref<256x8xf32, #tpu.memory_space<vmem>>, %arg2: memref<8x256xf32, #tpu.memory_space<vmem>>, %arg3: memref<8x1xf32, #tpu.memory_space<vmem>>) attributes {dimension_semantics = [#tpu.dimension_semantics<parallel>], iteration_bounds = array<i64: 1>, scalar_prefetch = 0 : i64, scratch_operands = 0 : i64, tpu.core_type = #tpu.core_type<tc>, window_params = [{pipeline_mode = #tpu.pipeline_mode<synchronous>, transform_indices = @transform_0, window_bounds = array<i64: 256, 8>}, {transform_indices = @transform_1, window_bounds = array<i64: 8, 256>}, {transform_indices = @transform_2, window_bounds = array<i64: 8, 1>}]} {
    %c0 = arith.constant 0 : index
    %c0_0 = arith.constant 0 : index
    %0 = vector.load %arg1[%c0, %c0_0] : memref<256x8xf32, #tpu.memory_space<vmem>>, vector<256x8xf32>
    %c0_1 = arith.constant 0 : index
    %c0_2 = arith.constant 0 : index
    %1 = vector.load %arg2[%c0_1, %c0_2] : memref<8x256xf32, #tpu.memory_space<vmem>>, vector<8x256xf32>
    %cst = arith.constant dense<0.000000e+00> : vector<8x8xf32>
    %2 = tpu.matmul %1, %0, %cst {dimension_numbers = #tpu.dot_dimension_numbers<[1], [0], [0], [1], [0, 0, 1, 1], [], []>, precision = #tpu.contract_precision<fp32>} : vector<8x256xf32>, vector<256x8xf32>, vector<8x8xf32> -> vector<8x8xf32>
    %3 = arith.mulf %1, %1 : vector<8x256xf32>
    %cst_3 = arith.constant dense<0.000000e+00> : vector<8x8xf32>
    %4 = tpu.matmul %3, %0, %cst_3 {dimension_numbers = #tpu.dot_dimension_numbers<[1], [0], [0], [1], [0, 0, 1, 1], [], []>, precision = #tpu.contract_precision<fp32>} : vector<8x256xf32>, vector<256x8xf32>, vector<8x8xf32> -> vector<8x8xf32>
    %5 = vector.extract_strided_slice %2 {offsets = [0, 0], sizes = [8, 1], strides = [1, 1]} : vector<8x8xf32> to vector<8x1xf32>
    %cst_4 = arith.constant 0.00308641978 : f32
    %6 = vector.broadcast %cst_4 : f32 to vector<8x1xf32>
    %7 = arith.mulf %5, %6 : vector<8x1xf32>
    %8 = vector.extract_strided_slice %4 {offsets = [0, 0], sizes = [8, 1], strides = [1, 1]} : vector<8x8xf32> to vector<8x1xf32>
    %cst_5 = arith.constant 0.00308641978 : f32
    %9 = vector.broadcast %cst_5 : f32 to vector<8x1xf32>
    %10 = arith.mulf %8, %9 : vector<8x1xf32>
    %11 = arith.mulf %7, %7 : vector<8x1xf32>
    %12 = arith.subf %10, %11 : vector<8x1xf32>
    %c0_6 = arith.constant 0 : index
    %c0_7 = arith.constant 0 : index
    %13 = vector.load %arg3[%c0_6, %c0_7] : memref<8x1xf32, #tpu.memory_space<vmem>>, vector<8x1xf32>
    tpu.vector_store %arg3[%c0_6, %c0_7], %12 {strides = array<i32>} : memref<8x1xf32, #tpu.memory_space<vmem>>, vector<8x1xf32>,
    return
  }
  func.func @transform_0(%arg0: i32) -> (i32, i32) {
    %c0_i32 = arith.constant 0 : i32
    %c0_i32_0 = arith.constant 0 : i32
    %c0_i32_1 = arith.constant 0 : i32
    return %c0_i32, %c0_i32_0 : i32, i32
  }
  func.func @transform_1(%arg0: i32) -> (i32, i32) {
    %c0_i32 = arith.constant 0 : i32
    %c0_i32_0 = arith.constant 0 : i32
    return %arg0, %c0_i32 : i32, i32
  }
  func.func @transform_2(%arg0: i32) -> (i32, i32) {
    %c0_i32 = arith.constant 0 : i32
    %c0_i32_0 = arith.constant 0 : i32
    return %arg0, %c0_i32 : i32, i32
  }
}

</mosaic_0001>

<bundles_post_ra>
// kernel: tpu_custom_call.1
= control target key start
LH: loop header
LB: loop body
LE: loop exit
PB: predicated region body
PF: predicated region fallthrough
CT: control target
= control target key end

     0   :  { %vm1775_vm0 = vcmask 7168   ;;  %s3253_s0 = inlined_call_operand.vmem [shape: f32[256,8], index: 0, kind: input, shape index: {}]   ;;  %s3254_s1 = inlined_call_operand.vmem [shape: f32[8,256], index: 1, kind: input, shape index: {}]   ;;  %s3255_s2 = inlined_call_operand.vmem [shape: f32[8,1], index: 2, kind: output, shape index: {}]  }
   0x1   :  { %v42_v0 = vld [vmem:[%s3253_s0 + $0xf8] sm:$0xff]  ;;  %v41_v2 = vld [vmem:[%s3253_s0 + $0xf0] sm:$0xff]  ;;  %v40_v7 = vld [vmem:[%s3253_s0 + $0xe8] sm:$0xff] }
   0x2   :  { %v26_v1 = vld [vmem:[%s3253_s0 + $0x78] sm:$0xff]  ;;  %v2225_v3 = vand.u32 4294901760, %v42_v0  ;;  %v2229_v5 = vand.u32 4294901760, %v41_v2  ;;  %v25_v6 = vld [vmem:[%s3253_s0 + $0x70] sm:$0xff]  ;;  %v24_v8 = vld [vmem:[%s3253_s0 + $0x68] sm:$0xff]  ;;  %v2242_v10 = vand.u32 4294901760, %v40_v7 }
   0x3   :  { %v2227_v4 = vand.u32 4294901760, %v26_v1  ;;  %v2240_v9 = vand.u32 4294901760, %v25_v6  ;;  %v2244_v11 = vand.u32 4294901760, %v24_v8  ;;  %v39_v12 = vld [vmem:[%s3253_s0 + $0xe0] sm:$0xff]  ;;  %v38_v14 = vld [vmem:[%s3253_s0 + $0xd8] sm:$0xff]  ;;  %v2273_v20 = vld [vmem:[%s3253_s0 + $0xd0] sm:$0xff] }
   0x4   :  { %v23_v13 = vld [vmem:[%s3253_s0 + $0x60] sm:$0xff]  ;;  %1781 = vmatprep.subr.mxu0 %v2225_v3  ;;  %v2256_v15 = vand.u32 4294901760, %v39_v12  ;;  %v2260_v17 = vand.u32 4294901760, %v38_v14  ;;  %v2263_v18 = vsub.f32 %v42_v0, %v2225_v3  ;;  %v2268_v19 = vld [vmem:[%s3253_s0 + $0x58] sm:$0xff]  ;;  %v2278_v21 = vld [vmem:[%s3253_s0 + $0x50] sm:$0xff]  ;;  %v2288_v24 = vand.u32 4294901760, %v2273_v20 }
   0x5   :  { %v2258_v16 = vand.u32 4294901760, %v23_v13  ;;  %1782 = vmatpush3.msra.mxu0 %v2227_v4  ;;  %v2282_v22 = vand.u32 4294901760, %v2268_v19  ;;  %v2285_v23 = vsub.f32 %v26_v1, %v2227_v4  ;;  %v2291_v25 = vsub.f32 %v41_v2, %v2229_v5  ;;  %v2296_v26 = vld [vmem:[%s3253_s0 + $0xc8] sm:$0xff]  ;;  %v2306_v28 = vld [vmem:[%s3253_s0 + $0xc0] sm:$0xff]  ;;  %v2365_v46 = vld [vmem:[%s3253_s0 + $0xb8] sm:$0xff] }
   0x6   :  { %3400 = vst [vmem:[#allocation2_spill] sm:$0xff] %v2263_v18  ;;  %v2301_v27 = vld [vmem:[%s3253_s0 + $0x48] sm:$0xff]  ;;  %1783 = vmatprep.subr.mxu0 %v2229_v5  ;;  %v2310_v29 = vand.u32 4294901760, %v2263_v18  ;;  %v2313_v30 = vand.u32 4294901760, %v2278_v21  ;;  %v2316_v31 = vsub.f32 %v25_v6, %v2240_v9  ;;  %v2319_v32 = vand.u32 4294901760, %v2296_v26  ;;  %v2337_v37 = vld [vmem:[%s3253_s0 + $0x40] sm:$0xff] }
   0x7   :  { %1784 = vmatpush3.msra.mxu0 %v2240_v9  ;;  %v2323_v33 = vand.u32 4294901760, %v2285_v23  ;;  %v2326_v34 = vand.u32 4294901760, %v2291_v25  ;;  %v2329_v35 = vsub.f32 %v40_v7, %v2242_v10  ;;  %v2332_v36 = vand.u32 4294901760, %v2301_v27  ;;  %v2381_v51 = vld [vmem:[%s3253_s0 + $0x38] sm:$0xff]  ;;  %v2396_v56 = vld [vmem:[%s3253_s0 + $0xb0] sm:$0xff]  ;;  %v2430_v2 = vld [vmem:[%s3253_s0 + $0xa8] sm:$0xff] }
   0x8   :  { %3401 = vst [vmem:[#allocation3_spill] sm:$0xff] %v2310_v29  ;;  %3402 = vst [vmem:[#allocation4_spill] sm:$0xff] %v2313_v30  ;;  %1785 = vmatprep.subr.mxu0 %v2242_v10  ;;  %v273_v38 = vsub.f32 %v2263_v18, %v2310_v29  ;;  %v2343_v39 = vand.u32 4294901760, %v2316_v31  ;;  %v2346_v40 = vsub.f32 %v24_v8, %v2244_v11  ;;  %v2349_v41 = vand.u32 4294901760, %v2306_v28  ;;  %v2413_v61 = vld [vmem:[%s3253_s0 + $0x30] sm:$0xff] }
   0x9   :  { %3403 = vst [vmem:[#allocation5_spill] sm:$0xff] %v2319_v32  ;;  %3404 = vst [vmem:[#allocation6_spill] sm:$0xff] %v2323_v33  ;;  %1786 = vmatpush3.msra.mxu0 %v2244_v11  ;;  %v161_v42 = vsub.f32 %v2285_v23, %v2323_v33  ;;  %v280_v43 = vsub.f32 %v2291_v25, %v2326_v34  ;;  %v2357_v44 = vand.u32 4294901760, %v2329_v35  ;;  %v2376_v50 = vand.u32 4294901760, %v2337_v37  ;;  %v2602_v33 = vld [vmem:[%s3253_s0 + $0x88] sm:$0xff] }
   0xa   :  { %3405 = vst [vmem:[#allocation7_spill] sm:$0xff] %v2326_v34  ;;  %3406 = vst [vmem:[#allocation8_spill] sm:$0xff] %v2332_v36  ;;  %v2360_v45 = vsub.f32 %v39_v12, %v2256_v15  ;;  %1787 = vmatprep.subr.mxu0 %v2256_v15  ;;  %v2368_v47 = vand.u32 4294901760, %v273_v38  ;;  %v168_v48 = vsub.f32 %v2316_v31, %v2343_v39  ;;  %v2373_v49 = vand.u32 4294901760, %v2346_v40 }
   0xb   :  { %3407 = vst [vmem:[#allocation9_spill] sm:$0xff] %v2343_v39  ;;  %3408 = vst [vmem:[#allocation10_spill] sm:$0xff] %v2349_v41  ;;  %1788 = vmatpush3.msra.mxu0 %v2258_v16  ;;  %v2384_v52 = vand.u32 4294901760, %v161_v42  ;;  %v2386_v53 = vand.u32 4294901760, %v280_v43  ;;  %v287_v54 = vsub.f32 %v2329_v35, %v2357_v44  ;;  %v2405_v59 = vsub.f32 %v23_v13, %v2258_v16  ;;  %v2449_v13 = vld [vmem:[%s3253_s0 + $0x28] sm:$0xff]  ;;  %v2583_v39 = vld [vmem:[%s3253_s0 + $0x10] sm:$0xff] }
   0xc   :  { %3409 = vst [vmem:[#allocation11_spill] sm:$0xff] %v2357_v44  ;;  %3410 = vst [vmem:[#allocation12_spill] sm:$0xff] %v2368_v47  ;;  %v2391_v55 = vand.u32 4294901760, %v2360_v45  ;;  %1789 = vmatprep.subr.mxu0 %v2260_v17  ;;  %1816 = vmatprep.subr.mxu1 %v2368_v47  ;;  %v2400_v57 = vand.u32 4294901760, %v168_v48  ;;  %v175_v58 = vsub.f32 %v2346_v40, %v2373_v49  ;;  %v2408_v60 = vand.u32 4294901760, %v2365_v46  ;;  %v2566_v44 = vld [vmem:[%s3253_s0 + $0x90] sm:$0xff] }
   0xd   :  { %3411 = vst [vmem:[#allocation13_spill] sm:$0xff] %v2373_v49  ;;  %3412 = vst [vmem:[#allocation14_spill] sm:$0xff] %v2376_v50  ;;  %1790 = vmatpush3.msra.mxu0 %v2282_v22  ;;  %1817 = vmatpush3.msra.mxu1 %v2384_v52  ;;  %v2417_v62 = vand.u32 4294901760, %v287_v54  ;;  %v2422_v0 = vsub.f32 %v38_v14, %v2260_v17  ;;  %v2425_v1 = vand.u32 4294901760, %v2381_v51  ;;  %v2437_v7 = vand.u32 4294901760, %v2405_v59  ;;  %v2548_v49 = vld [vmem:[%s3253_s0 + $0x18] sm:$0xff] }
   0xe   :  { %3413 = vst [vmem:[#allocation15_spill] sm:$0xff] %v2384_v52  ;;  %3414 = vst [vmem:[#allocation16_spill] sm:$0xff] %v2386_v53  ;;  %v294_v63 = vsub.f32 %v2360_v45, %v2391_v55  ;;  %1791 = vmatprep.subr.mxu0 %v2288_v24  ;;  %1818 = vmatprep.subr.mxu1 %v2386_v53  ;;  %v2434_v6 = vand.u32 4294901760, %v175_v58  ;;  %v2441_v8 = vsub.f32 %v2268_v19, %v2282_v22  ;;  %v2482_v58 = vld [vmem:[%s3253_s0 + $0xa0] sm:$0xff] }
   0xf   :  { %3415 = vst [vmem:[#allocation17_spill] sm:$0xff] %v2391_v55  ;;  %3416 = vst [vmem:[#allocation18_spill] sm:$0xff] %v2400_v57  ;;  %v2444_v12 = vand.u32 4294901760, %v2396_v56  ;;  %1792 = vmatpush3.msra.mxu0 %v2313_v30  ;;  %1819 = vmatpush3.msra.mxu1 %v2400_v57  ;;  %v2456_v38 = vand.u32 4294901760, %v2422_v0  ;;  %v2460_v19 = vsub.f32 %v2273_v20, %v2288_v24  ;;  %v2463_v42 = vand.u32 4294901760, %v2413_v61 }
  0x10   :  { %3417 = vst [vmem:[#allocation19_spill] sm:$0xff] %v2408_v60  ;;  %3418 = vst [vmem:[#allocation20_spill] sm:$0xff] %v2417_v62  ;;  %v2453_v14 = vand.u32 4294901760, %v294_v63  ;;  %1793 = vmatprep.subr.mxu0 %v2319_v32  ;;  %1820 = vmatprep.subr.mxu1 %v2417_v62  ;;  %v182_v43 = vsub.f32 %v2405_v59, %v2437_v7  ;;  %v2470_v48 = vand.u32 4294901760, %v2441_v8  ;;  %v2477_v20 = vand.u32 4294901760, %v2430_v2 }
  0x11   :  { %3419 = vst [vmem:[#allocation21_spill] sm:$0xff] %v2425_v1  ;;  %3420 = vst [vmem:[#allocation22_spill] sm:$0xff] %v2434_v6  ;;  %v2474_v54 = vsub.f32 %v2278_v21, %v2313_v30  ;;  %1794 = vmatpush3.msra.mxu0 %v2332_v36  ;;  %1821 = vmatpush3.msra.mxu1 %v2434_v6  ;;  %v301_v63 = vsub.f32 %v2422_v0, %v2456_v38  ;;  %v2489_v62 = vand.u32 4294901760, %v2460_v19 }
  0x12   :  { %3421 = vst [vmem:[#allocation23_spill] sm:$0xff] %v2437_v7  ;;  %3422 = vst [vmem:[#allocation24_spill] sm:$0xff] %v2444_v12  ;;  %v2493_v21 = vsub.f32 %v2296_v26, %v2319_v32  ;;  %v2496_v57 = vand.u32 4294901760, %v2449_v13  ;;  %1795 = vmatprep.subr.mxu0 %v2349_v41  ;;  %1822 = vmatprep.subr.mxu1 %v2453_v14  ;;  %v2500_v53 = vand.u32 4294901760, %v182_v43  ;;  %v2514_v26 = vld [vmem:[%s3253_s0 + $0x20] sm:$0xff]  ;;  %v2597_v34 = vand.u32 4294901760, %v2548_v49 }
  0x13   :  { %3423 = vst [vmem:[#allocation25_spill] sm:$0xff] %v2453_v14  ;;  %3424 = vst [vmem:[#allocation26_spill] sm:$0xff] %v2456_v38  ;;  %v189_v6 = vsub.f32 %v2441_v8, %v2470_v48  ;;  %v2505_v52 = vand.u32 4294901760, %v2474_v54  ;;  %v2509_v47 = vsub.f32 %v2301_v27, %v2332_v36  ;;  %1796 = vmatpush3.msra.mxu0 %v2376_v50  ;;  %v2517_v14 = vand.u32 4294901760, %v301_v63  ;;  %v2530_v27 = vld [vmem:[%s3253_s0 + $0x98] sm:$0xff]  ;;  %v2718_v32 = vld [vmem:[%s3254_s1] sm:$0xff] }
  0x14   :  { %3425 = vst [vmem:[#allocation27_spill] sm:$0xff] %v2463_v42  ;;  %3426 = vst [vmem:[#allocation28_spill] sm:$0xff] %v2470_v48  ;;  %v308_v43 = vsub.f32 %v2460_v19, %v2489_v62  ;;  %v2522_v48 = vand.u32 4294901760, %v2493_v21  ;;  %v2525_v38 = vand.u32 4294901760, %v2482_v58  ;;  %1823 = vmatpush3.msra.mxu1 %v2500_v53  ;;  %1797 = vmatprep.subr.mxu0 %v2408_v60  ;;  %v2615_v29 = vand.u32 4294901760, %v2566_v44 }
  0x15   :  { %3427 = vst [vmem:[#allocation29_spill] sm:$0xff] %v2474_v54  ;;  %3428 = vst [vmem:[#allocation30_spill] sm:$0xff] %v2477_v20  ;;  %v2534_v63 = vand.u32 4294901760, %v189_v6  ;;  %v2539_v7 = vand.u32 4294901760, %v2509_v47  ;;  %v2543_v55 = vsub.f32 %v2306_v28, %v2349_v41  ;;  %1824 = vmatprep.subr.mxu1 %v2517_v14  ;;  %1798 = vmatpush3.msra.mxu0 %v2425_v1 }
  0x16   :  { %3429 = vst [vmem:[#allocation31_spill] sm:$0xff] %v2489_v62  ;;  %3430 = vst [vmem:[#allocation32_spill] sm:$0xff] %v2493_v21  ;;  %v196_v62 = vsub.f32 %v2474_v54, %v2505_v52  ;;  %v2552_v6 = vand.u32 4294901760, %v308_v43  ;;  %v2561_v28 = vsub.f32 %v2337_v37, %v2376_v50  ;;  %1799 = vmatprep.subr.mxu0 %v2444_v12  ;;  %v2578_v37 = vand.u32 4294901760, %v2530_v27 }
  0x17   :  { %3431 = vst [vmem:[#allocation33_spill] sm:$0xff] %v2496_v57  ;;  %3432 = vst [vmem:[#allocation34_spill] sm:$0xff] %v2500_v53  ;;  %v315_v53 = vsub.f32 %v2493_v21, %v2522_v48  ;;  %1825 = vmatpush3.msra.mxu1 %v2534_v63  ;;  %1800 = vmatpush3.msra.mxu0 %v2463_v42 }
  0x18   :  { %3433 = vst [vmem:[#allocation35_spill] sm:$0xff] %v2505_v52  ;;  %3434 = vst [vmem:[#allocation36_spill] sm:$0xff] %v2509_v47  ;;  %v2557_v52 = vand.u32 4294901760, %v2514_v26  ;;  %v2570_v43 = vand.u32 4294901760, %v196_v62  ;;  %1826 = vmatprep.subr.mxu1 %v2552_v6  ;;  %1801 = vmatprep.subr.mxu0 %v2477_v20 }
  0x19   :  { %3435 = vst [vmem:[#allocation37_spill] sm:$0xff] %v2517_v14  ;;  %3436 = vst [vmem:[#allocation38_spill] sm:$0xff] %v2522_v48  ;;  %v203_v14 = vsub.f32 %v2509_v47, %v2539_v7  ;;  %v2575_v48 = vand.u32 4294901760, %v2543_v55  ;;  %v2587_v62 = vand.u32 4294901760, %v315_v53  ;;  %1802 = vmatpush3.msra.mxu0 %v2496_v57 }
  0x1a   :  { %3437 = vst [vmem:[#allocation39_spill] sm:$0xff] %v2525_v38  ;;  %3438 = vst [vmem:[#allocation40_spill] sm:$0xff] %v2534_v63  ;;  %v2590_v63 = vand.u32 4294901760, %v2561_v28  ;;  %1827 = vmatpush3.msra.mxu1 %v2570_v43  ;;  %1803 = vmatprep.subr.mxu0 %v2525_v38 }
  0x1b   :  { %3439 = vst [vmem:[#allocation41_spill] sm:$0xff] %v2539_v7  ;;  %3440 = vst [vmem:[#allocation42_spill] sm:$0xff] %v2543_v55  ;;  %v2594_v7 = vsub.f32 %v2365_v46, %v2408_v60  ;;  %v2606_v53 = vand.u32 4294901760, %v203_v14  ;;  %v2612_v46 = vsub.f32 %v2381_v51, %v2425_v1  ;;  %1828 = vmatprep.subr.mxu1 %v2587_v62  ;;  %v2629_v51 = vand.u32 4294901760, %v2583_v39  ;;  %v2634_v1 = vld [vmem:[%s3253_s0 + $0x8] sm:$0xff]  ;;  %v2653_v60 = vld [vmem:[%s3253_s0 + $0x80] sm:$0xff] }
  0x1c   :  { %3441 = vst [vmem:[#allocation43_spill] sm:$0xff] %v2552_v6  ;;  %3442 = vst [vmem:[#allocation44_spill] sm:$0xff] %v2561_v28  ;;  %v322_v6 = vsub.f32 %v2543_v55, %v2575_v48  ;;  %1804 = vmatpush3.msra.mxu0 %v2557_v52  ;;  %v2675_v41 = vand.u32 4294901760, %v2634_v1 }
  0x1d   :  { %3443 = vst [vmem:[#allocation45_spill] sm:$0xff] %v2570_v43  ;;  %3444 = vst [vmem:[#allocation46_spill] sm:$0xff] %v2575_v48  ;;  %v210_v43 = vsub.f32 %v2561_v28, %v2590_v63  ;;  %v2622_v14 = vand.u32 4294901760, %v2594_v7  ;;  %v2626_v48 = vsub.f32 %v2396_v56, %v2444_v12  ;;  %1829 = vmatpush3.msra.mxu1 %v2606_v53  ;;  %v2648_v12 = vand.u32 4294901760, %v2602_v33 }
  0x1e   :  { %3445 = vst [vmem:[#allocation47_spill] sm:$0xff] %v2587_v62  ;;  %3446 = vst [vmem:[#allocation48_spill] sm:$0xff] %v2590_v63  ;;  %v2638_v62 = vand.u32 4294901760, %v322_v6  ;;  %v2641_v63 = vand.u32 4294901760, %v2612_v46  ;;  %v2645_v56 = vsub.f32 %v2413_v61, %v2463_v42  ;;  %v2665_v61 = vsub.f32 %v2430_v2, %v2477_v20  ;;  %1805 = vmatprep.subr.mxu0 %v2578_v37  ;;  %v2684_v2 = vld [vmem:[%s3253_s0] sm:$0xff] }
  0x1f   :  { %3447 = vst [vmem:[#allocation49_spill] sm:$0xff] %v2594_v7  ;;  %3448 = vst [vmem:[#allocation50_spill] sm:$0xff] %v2606_v53  ;;  %v2656_v53 = vand.u32 4294901760, %v210_v43  ;;  %v329_v6 = vsub.f32 %v2594_v7, %v2622_v14  ;;  %v2661_v50 = vand.u32 4294901760, %v2626_v48  ;;  %1806 = vmatpush3.msra.mxu0 %v2597_v34  ;;  %v2727_v30 = vand.u32 4294901760, %v2684_v2 }
  0x20   :  { %3449 = vst [vmem:[#allocation51_spill] sm:$0xff] %v2612_v46  ;;  %3450 = vst [vmem:[#allocation52_spill] sm:$0xff] %v2615_v29  ;;  %1830 = vmatprep.subr.mxu1 %v2638_v62  ;;  %v217_v42 = vsub.f32 %v2612_v46, %v2641_v63  ;;  %v2672_v43 = vand.u32 4294901760, %v2645_v56  ;;  %v2693_v20 = vand.u32 4294901760, %v2665_v61  ;;  %1807 = vmatprep.subr.mxu0 %v2615_v29 }
  0x21   :  { %3451 = vst [vmem:[#allocation53_spill] sm:$0xff] %v2622_v14  ;;  %3452 = vst [vmem:[#allocation54_spill] sm:$0xff] %v2626_v48  ;;  %v2679_v14 = vsub.f32 %v2449_v13, %v2496_v57  ;;  %1831 = vmatpush3.msra.mxu1 %v2656_v53  ;;  %v2696_v13 = vand.u32 4294901760, %v2653_v60  ;;  %v2701_v57 = vld [vmem:[%s3254_s1 + $0x8] sm:$0xff]  ;;  %1808 = vmatpush3.msra.mxu0 %v2629_v51 }
  0x22   :  { %3453 = vst [vmem:[#allocation55_spill] sm:$0xff] %v2629_v51  ;;  %3454 = vst [vmem:[#allocation56_spill] sm:$0xff] %v2638_v62  ;;  %v2687_v62 = vand.u32 4294901760, %v329_v6  ;;  %v2703_v36 = vand.u32 4294901760, %v217_v42  ;;  %v224_v6 = vsub.f32 %v2645_v56, %v2672_v43  ;;  %1809 = vmatprep.subr.mxu0 %v2648_v12 }
  0x23   :  { %3455 = vst [vmem:[#allocation57_spill] sm:$0xff] %v2641_v63  ;;  %3456 = vst [vmem:[#allocation58_spill] sm:$0xff] %v2645_v56  ;;  %v336_v63 = vsub.f32 %v2626_v48, %v2661_v50  ;;  %1810 = vmatpush3.msra.mxu0 %v2675_v41 }
  0x24   :  { %3457 = vst [vmem:[#allocation59_spill] sm:$0xff] %v2648_v12  ;;  %3458 = vst [vmem:[#allocation60_spill] sm:$0xff] %v2656_v53  ;;  %v2709_v53 = vand.u32 4294901760, %v2679_v14  ;;  %1832 = vmatprep.subr.mxu1 %v2687_v62  ;;  %1811 = vmatprep.subr.mxu0 %v2696_v13 }
  0x25   :  { %3459 = vst [vmem:[#allocation61_spill] sm:$0xff] %v2661_v50  ;;  %3460 = vst [vmem:[#allocation62_spill] sm:$0xff] %v2665_v61  ;;  %v2713_v50 = vsub.f32 %v2482_v58, %v2525_v38  ;;  %v2721_v42 = vand.u32 4294901760, %v336_v63  ;;  %v2731_v58 = vsub.f32 %v2514_v26, %v2557_v52  ;;  %1833 = vmatpush3.msra.mxu1 %v2703_v36  ;;  %v2734_v38 = vand.u32 4294901760, %v224_v6 }
  0x26   :  { %3461 = vst [vmem:[#allocation63_spill] sm:$0xff] %v2672_v43  ;;  %3462 = vst [vmem:[#allocation64_spill] sm:$0xff] %v2679_v14  ;;  %v343_v43 = vsub.f32 %v2665_v61, %v2693_v20  ;;  %v231_v63 = vsub.f32 %v2679_v14, %v2709_v53  ;;  %v2753_v6 = vand.u32 4294901760, %v2718_v32  ;;  %1812 = vmatpush3.msra.mxu0 %v2727_v30 }
  0x27   :  { %3463 = vst [vmem:[#allocation65_spill] sm:$0xff] %v2687_v62  ;;  %3464 = vst [vmem:[#allocation66_spill] sm:$0xff] %v2693_v20  ;;  %v2740_v62 = vand.u32 4294901760, %v2713_v50  ;;  %v2743_v20 = vand.u32 4294901760, %v2701_v57  ;;  %1834 = vmatprep.subr.mxu1 %v2721_v42  ;;  %v2750_v26 = vand.u32 4294901760, %v2731_v58  ;;  %1851 = vmatprep.subr.mxu0 %v2263_v18 }
  0x28   :  { %3465 = vst [vmem:[#allocation67_spill] sm:$0xff] %v2701_v57  ;;  %3466 = vst [vmem:[#allocation68_spill] sm:$0xff] %v2703_v36  ;;  %v2746_v61 = vand.u32 4294901760, %v343_v43  ;;  %1835 = vmatpush3.msra.mxu1 %v2734_v38  ;;  %v2756_v36 = vand.u32 4294901760, %v231_v63  ;;  %v2771_v63 = vsub.f32 %v2530_v27, %v2578_v37 }
  0x29   :  { %3467 = vst [vmem:[#allocation69_spill] sm:$0xff] %v2709_v53  ;;  %3468 = vst [vmem:[#allocation70_spill] sm:$0xff] %v2713_v50  ;;  %v350_v53 = vsub.f32 %v2713_v50, %v2740_v62  ;;  %v2763_v43 = vsub.f32 %v2701_v57, %v2743_v20  ;;  %382 = vmatprep.mubr.f32.mxu1 %v2743_v20 }
  0x2a   :  { %3469 = vst [vmem:[#allocation71_spill] sm:$0xff] %v2718_v32  ;;  %3470 = vst [vmem:[#allocation72_spill] sm:$0xff] %v2721_v42  ;;  %1836 = vmatprep.subr.mxu1 %v2746_v61  ;;  %v238_v42 = vsub.f32 %v2731_v58, %v2750_v26  ;;  %v2789_v27 = vand.u32 4294901760, %v2771_v63 }
  0x2b   :  { %3471 = vst [vmem:[#allocation73_spill] sm:$0xff] %v2731_v58  ;;  %3472 = vst [vmem:[#allocation74_spill] sm:$0xff] %v2734_v38  ;;  %v2775_v38 = vsub.f32 %v2718_v32, %v2753_v6  ;;  %1837 = vmatpush3.msra.mxu1 %v2756_v36  ;;  %v3355_v57 = vand.u32 4294901760, %v2763_v43  ;;  %v2810_v32 = vsub.f32 %v2602_v33, %v2648_v12 }
  0x2c   :  { %3473 = vst [vmem:[#allocation75_spill] sm:$0xff] %v2740_v62  ;;  %3474 = vst [vmem:[#allocation76_spill] sm:$0xff] %v2743_v20  ;;  %v2778_v62 = vand.u32 4294901760, %v350_v53 }
  0x2d   :  { %3475 = vst [vmem:[#allocation77_spill] sm:$0xff] %v2746_v61  ;;  %3476 = vst [vmem:[#allocation78_spill] sm:$0xff] %v2750_v26  ;;  %v2784_v61 = vsub.f32 %v2548_v49, %v2597_v34  ;;  %v2786_v26 = vand.u32 4294901760, %v238_v42  ;;  %v144_v49 = vsub.f32 %v2763_v43, %v3355_v57  ;;  %v2806_v42 = vsub.f32 %v2583_v39, %v2629_v51 }
  0x2e   :  { %3477 = vst [vmem:[#allocation79_spill] sm:$0xff] %v2756_v36  ;;  %3478 = vst [vmem:[#allocation80_spill] sm:$0xff] %v2771_v63  ;;  %v2794_v36 = vsub.f32 %v2566_v44, %v2615_v29  ;;  %1838 = vmatprep.subr.mxu1 %v2778_v62  ;;  %v357_v44 = vsub.f32 %v2771_v63, %v2789_v27  ;;  %v3487_v18 = vand.u32 4294901760, %v2775_v38 }
  0x2f   :  { %3479 = vst [vmem:[#allocation81_spill] sm:$0xff] %v2778_v62  ;;  %3480 = vst [vmem:[#allocation82_spill] sm:$0xff] %v2784_v61  ;;  %v2802_v53 = vand.u32 4294901760, %v2784_v61  ;;  %1839 = vmatpush3.msra.mxu1 %v2786_v26  ;;  %v2823_v39 = vsub.f32 %v2634_v1, %v2675_v41  ;;  %v145_v20 = vand.u32 4294901760, %v144_v49 }
  0x30   :  { %3481 = vst [vmem:[#allocation83_spill] sm:$0xff] %v2786_v26  ;;  %3482 = vst [vmem:[#allocation84_spill] sm:$0xff] %v2789_v27  ;;  %v150_v57 = vsub.f32 %v2775_v38, %v3487_v18  ;;  %v2819_v62 = vand.u32 4294901760, %v2794_v36  ;;  %v2828_v26 = vand.u32 4294901760, %v2806_v42  ;;  %v2831_v27 = vand.u32 4294901760, %v2810_v32 }
  0x31   :  { %3483 = vst [vmem:[#allocation85_spill] sm:$0xff] %v2794_v36  ;;  %3484 = vst [vmem:[#allocation86_spill] sm:$0xff] %v2802_v53  ;;  %v245_v33 = vsub.f32 %v2784_v61, %v2802_v53  ;;  %v2833_v12 = vand.u32 4294901760, %v357_v44  ;;  %v2838_v29 = vand.u32 4294901760, %v2823_v39  ;;  %146 = vmatprep.mubr.f32.mxu0 %v145_v20  ;;  %v2848_v44 = vsub.f32 %v2653_v60, %v2696_v13 }
  0x32   :  { %3485 = vst [vmem:[#allocation87_spill] sm:$0xff] %v2806_v42  ;;  %3486 = vst [vmem:[#allocation88_spill] sm:$0xff] %v2810_v32  ;;  %v151_v18 = vand.u32 4294901760, %v150_v57  ;;  %v364_v51 = vsub.f32 %v2794_v36, %v2819_v62  ;;  %v252_v49 = vsub.f32 %v2806_v42, %v2828_v26  ;;  %v371_v53 = vsub.f32 %v2810_v32, %v2831_v27 }
  0x33   :  { %3488 = vst [vmem:[#allocation89_spill] sm:$0xff] %v2819_v62  ;;  %3489 = vst [vmem:[#allocation90_spill] sm:$0xff] %v2823_v39  ;;  %v2840_v1 = vand.u32 4294901760, %v245_v33  ;;  %1840 = vmatprep.subr.mxu1 %v2833_v12  ;;  %v259_v20 = vsub.f32 %v2823_v39, %v2838_v29  ;;  %v2857_v33 = vsub.f32 %v2684_v2, %v2727_v30 }
  0x34   :  { %3490 = vst [vmem:[#allocation91_spill] sm:$0xff] %v2828_v26  ;;  %3491 = vst [vmem:[#allocation92_spill] sm:$0xff] %v2831_v27  ;;  %152 = vmatmul.mubr.f32.vlgmr.msra.gmra.mxu0 %v151_v18  ;;  %v2851_v57 = vand.u32 4294901760, %v364_v51  ;;  %v2861_v27 = vand.u32 4294901760, %v252_v49  ;;  %v2863_v60 = vand.u32 4294901760, %v371_v53 }
  0x35   :  { %3492 = vst [vmem:[#allocation93_spill] sm:$0xff] %v2833_v12  ;;  %3493 = vst [vmem:[#allocation94_spill] sm:$0xff] %v2838_v29  ;;  %1841 = vmatpush3.msra.mxu1 %v2840_v1  ;;  %1852 = vmatpush3.msra.mxu0 %v2285_v23  ;;  %v2866_v12 = vand.u32 4294901760, %v2848_v44  ;;  %v2870_v51 = vand.u32 4294901760, %v259_v20  ;;  %v2873_v2 = vand.u32 4294901760, %v2857_v33 }
  0x36   :  { %3494 = vst [vmem:[#allocation95_spill] sm:$0xff] %v2848_v44  ;;  %3495 = vst [vmem:[#allocation96_spill] sm:$0xff] %v2857_v33  ;;  %1842 = vmatprep.subr.mxu1 %v2851_v57  ;;  %1853 = vmatprep.subr.mxu0 %v2291_v25 }
  0x37   :  { %3496 = vst [vmem:[#allocation97_spill] sm:$0xff] %v2866_v12  ;;  %3497 = vst [vmem:[#allocation98_spill] sm:$0xff] %v2873_v2  ;;  %1843 = vmatpush3.msra.mxu1 %v2861_v27  ;;  %1854 = vmatpush3.msra.mxu0 %v2316_v31  ;;  %v378_v53 = vsub.f32 %v2848_v44, %v2866_v12  ;;  %v266_v18 = vsub.f32 %v2857_v33, %v2873_v2 }
  0x38   :  { %1844 = vmatprep.subr.mxu1 %v2863_v60  ;;  %1855 = vmatprep.subr.mxu0 %v2329_v35 }
  0x39   :  { %1845 = vmatpush3.msra.mxu1 %v2870_v51  ;;  %1856 = vmatpush3.msra.mxu0 %v2346_v40  ;;  %v2885_v49 = vand.u32 4294901760, %v378_v53  ;;  %v2888_v20 = vand.u32 4294901760, %v266_v18  ;;  %v3498_v53 = vld [vmem:[#allocation4_spill] sm:$0xff]  ;;  %v3499_v18 = vld [vmem:[#allocation62_spill] sm:$0xff] }
  0x3a   :  { %1857 = vmatprep.subr.mxu0 %v2360_v45  ;;  %519 = vmatprep.mubr.f32.mxu0 %v2763_v43 }
  0x3b   :  { %1846 = vmatprep.subr.mxu1 %v2885_v49  ;;  %1858 = vmatpush3.msra.mxu0 %v2405_v59 }
  0x3c   :  { %1847 = vmatpush3.msra.mxu1 %v2888_v20  ;;  %1859 = vmatprep.subr.mxu0 %v2422_v0 }
  0x3d   :  { %384 = vmatmul.mubr.f32.vlgmr.msra.gmra.mxu1 %v2753_v6  ;;  %1886 = vmatprep.subr.mxu1 %v2225_v3 }
  0x3e   :  { %1860 = vmatpush3.msra.mxu0 %v2441_v8  ;;  %1887 = vmatpush3.msra.mxu1 %v2227_v4 }
  0x3f   :  { %1861 = vmatprep.subr.mxu0 %v2460_v19  ;;  %1888 = vmatprep.subr.mxu1 %v2229_v5 }
  0x40   :  { %1862 = vmatpush3.msra.mxu0 %v2474_v54  ;;  %1889 = vmatpush3.msra.mxu1 %v2240_v9  ;;  %v3524_v54 = vld [vmem:[#allocation26_spill] sm:$0xff] }
  0x41   :  { %1863 = vmatprep.subr.mxu0 %v2493_v21  ;;  %1890 = vmatprep.subr.mxu1 %v2242_v10  ;;  %v3519_v21 = vld [vmem:[#allocation13_spill] sm:$0xff] }
  0x42   :  { %1864 = vmatpush3.msra.mxu0 %v2509_v47  ;;  %1891 = vmatpush3.msra.mxu1 %v2244_v11  ;;  %v3518_v47 = vld [vmem:[#allocation11_spill] sm:$0xff] }
  0x43   :  { %1865 = vmatprep.subr.mxu0 %v2543_v55  ;;  %1892 = vmatprep.subr.mxu1 %v2256_v15  ;;  %v3516_v55 = vld [vmem:[#allocation9_spill] sm:$0xff] }
  0x44   :  { %1866 = vmatpush3.msra.mxu0 %v2561_v28  ;;  %1893 = vmatpush3.msra.mxu1 %v2258_v16  ;;  %v3500_v28 = vld [vmem:[#allocation5_spill] sm:$0xff] }
  0x45   :  { %1867 = vmatprep.subr.mxu0 %v2594_v7  ;;  %1894 = vmatprep.subr.mxu1 %v2260_v17  ;;  %v3501_v7 = vld [vmem:[#allocation8_spill] sm:$0xff] }
  0x46   :  { %1868 = vmatpush3.msra.mxu0 %v2612_v46  ;;  %1895 = vmatpush3.msra.mxu1 %v2282_v22  ;;  %v3502_v46 = vld [vmem:[#allocation10_spill] sm:$0xff] }
  0x47   :  { %1869 = vmatprep.subr.mxu0 %v2626_v48  ;;  %1896 = vmatprep.subr.mxu1 %v2288_v24  ;;  %v3503_v48 = vld [vmem:[#allocation14_spill] sm:$0xff] }
  0x48   :  { %1870 = vmatpush3.msra.mxu0 %v2645_v56  ;;  %1897 = vmatpush3.msra.mxu1 %v3498_v53  ;;  %v3504_v56 = vld [vmem:[#allocation19_spill] sm:$0xff] }
  0x49   :  { %1871 = vmatprep.subr.mxu0 %v3499_v18  ;;  %1898 = vmatprep.subr.mxu1 %v3500_v28  ;;  %v3505_v18 = vld [vmem:[#allocation21_spill] sm:$0xff] }
  0x4a   :  { %1872 = vmatpush3.msra.mxu0 %v2679_v14  ;;  %1899 = vmatpush3.msra.mxu1 %v3501_v7  ;;  %v3506_v14 = vld [vmem:[#allocation24_spill] sm:$0xff] }
  0x4b   :  { %1873 = vmatprep.subr.mxu0 %v2713_v50  ;;  %1900 = vmatprep.subr.mxu1 %v3502_v46  ;;  %v3507_v50 = vld [vmem:[#allocation27_spill] sm:$0xff] }
  0x4c   :  { %1874 = vmatpush3.msra.mxu0 %v2731_v58  ;;  %1901 = vmatpush3.msra.mxu1 %v3503_v48  ;;  %v3508_v58 = vld [vmem:[#allocation30_spill] sm:$0xff] }
  0x4d   :  { %1875 = vmatprep.subr.mxu0 %v2771_v63  ;;  %1902 = vmatprep.subr.mxu1 %v3504_v56  ;;  %v3509_v63 = vld [vmem:[#allocation33_spill] sm:$0xff] }
  0x4e   :  { %1876 = vmatpush3.msra.mxu0 %v2784_v61  ;;  %1903 = vmatpush3.msra.mxu1 %v3505_v18  ;;  %v3510_v61 = vld [vmem:[#allocation39_spill] sm:$0xff] }
  0x4f   :  { %1877 = vmatprep.subr.mxu0 %v2794_v36  ;;  %1904 = vmatprep.subr.mxu1 %v3506_v14  ;;  %v3514_v36 = vld [vmem:[#allocation7_spill] sm:$0xff] }
  0x50   :  { %1878 = vmatpush3.msra.mxu0 %v2806_v42  ;;  %1905 = vmatpush3.msra.mxu1 %v3507_v50  ;;  %v3511_v42 = vld [vmem:[#allocation3_spill] sm:$0xff] }
  0x51   :  { %1879 = vmatprep.subr.mxu0 %v2810_v32  ;;  %1906 = vmatprep.subr.mxu1 %v3508_v58  ;;  %v3512_v32 = vld [vmem:[#allocation6_spill] sm:$0xff] }
  0x52   :  { %1880 = vmatpush3.msra.mxu0 %v2823_v39  ;;  %1907 = vmatpush3.msra.mxu1 %v3509_v63  ;;  %v3513_v39 = vld [vmem:[#allocation52_spill] sm:$0xff] }
  0x53   :  { %1881 = vmatprep.subr.mxu0 %v2848_v44  ;;  %1908 = vmatprep.subr.mxu1 %v3510_v61  ;;  %v3515_v44 = vld [vmem:[#allocation55_spill] sm:$0xff] }
  0x54   :  { %1882 = vmatpush3.msra.mxu0 %v2857_v33  ;;  %1909 = vmatpush3.msra.mxu1 %v2557_v52  ;;  %v3517_v33 = vld [vmem:[#allocation59_spill] sm:$0xff] }
  0x55   :  { %522 = vmatmul.mubr.f32.vlgmr.msra.gmra.mxu0 %v2775_v38  ;;  %1910 = vmatprep.subr.mxu1 %v2578_v37 }
  0x56   :  { %1921 = vmatprep.subr.mxu0 %v3511_v42  ;;  %1911 = vmatpush3.msra.mxu1 %v2597_v34  ;;  %v3520_v42 = vld [vmem:[#allocation17_spill] sm:$0xff] }
  0x57   :  { %1922 = vmatpush3.msra.mxu0 %v3512_v32  ;;  %1912 = vmatprep.subr.mxu1 %v3513_v39  ;;  %v3522_v32 = vld [vmem:[#allocation23_spill] sm:$0xff] }
  0x58   :  { %1923 = vmatprep.subr.mxu0 %v3514_v36  ;;  %1913 = vmatpush3.msra.mxu1 %v3515_v44  ;;  %v3521_v36 = vand.u32 4294901760, %v2763_v43  ;;  %v3531_v43 = vld [vmem:[#allocation48_spill] sm:$0xff] }
  0x59   :  { %1924 = vmatpush3.msra.mxu0 %v3516_v55  ;;  %1914 = vmatprep.subr.mxu1 %v3517_v33  ;;  %v3523_v55 = vand.u32 4294901760, %v2775_v38  ;;  %v3530_v38 = vld [vmem:[#allocation46_spill] sm:$0xff] }
  0x5a   :  { %1925 = vmatprep.subr.mxu0 %v3518_v47  ;;  %1915 = vmatpush3.msra.mxu1 %v2675_v41  ;;  %v3525_v47 = vld [vmem:[#allocation28_spill] sm:$0xff] }
  0x5b   :  { %1926 = vmatpush3.msra.mxu0 %v3519_v21  ;;  %1916 = vmatprep.subr.mxu1 %v2696_v13  ;;  %v3526_v21 = vld [vmem:[#allocation31_spill] sm:$0xff] }
  0x5c   :  { %1927 = vmatprep.subr.mxu0 %v3520_v42  ;;  %1917 = vmatpush3.msra.mxu1 %v2727_v30  ;;  %v3527_v42 = vld [vmem:[#allocation35_spill] sm:$0xff] }
  0x5d   :  { %626 = vmatprep.mubr.f32.mxu1 %v3521_v36  ;;  %1928 = vmatpush3.msra.mxu0 %v3522_v32  ;;  %v3528_v36 = vld [vmem:[#allocation38_spill] sm:$0xff] }
  0x5e   :  { %630 = vmatmul.mubr.f32.vlgmr.msra.gmra.mxu1 %v3523_v55  ;;  %1929 = vmatprep.subr.mxu0 %v3524_v54  ;;  %v3529_v55 = vld [vmem:[#allocation41_spill] sm:$0xff] }
  0x5f   :  { %1956 = vmatprep.subr.mxu1 %v2225_v3  ;;  %1930 = vmatpush3.msra.mxu0 %v3525_v47  ;;  %v3568_v54 = vld [vmem:[#allocation81_spill] sm:$0xff] }
  0x60   :  { %1957 = vmatpush3.msra.mxu1 %v2227_v4  ;;  %1931 = vmatprep.subr.mxu0 %v3526_v21  ;;  %v3532_v21 = vld [vmem:[#allocation53_spill] sm:$0xff] }
  0x61   :  { %1958 = vmatprep.subr.mxu1 %v2229_v5  ;;  %1932 = vmatpush3.msra.mxu0 %v3527_v42  ;;  %v3533_v42 = vld [vmem:[#allocation57_spill] sm:$0xff] }
  0x62   :  { %1959 = vmatpush3.msra.mxu1 %v2240_v9  ;;  %1933 = vmatprep.subr.mxu0 %v3528_v36  ;;  %v3534_v36 = vld [vmem:[#allocation61_spill] sm:$0xff] }
  0x63   :  { %1960 = vmatprep.subr.mxu1 %v2242_v10  ;;  %1934 = vmatpush3.msra.mxu0 %v3529_v55  ;;  %v3535_v55 = vld [vmem:[#allocation63_spill] sm:$0xff] }
  0x64   :  { %1961 = vmatpush3.msra.mxu1 %v2244_v11  ;;  %1935 = vmatprep.subr.mxu0 %v3530_v38  ;;  %v3536_v38 = vld [vmem:[#allocation66_spill] sm:$0xff] }
  0x65   :  { %1962 = vmatprep.subr.mxu1 %v2256_v15  ;;  %1936 = vmatpush3.msra.mxu0 %v3531_v43  ;;  %v3537_v43 = vld [vmem:[#allocation69_spill] sm:$0xff] }
  0x66   :  { %1963 = vmatpush3.msra.mxu1 %v2258_v16  ;;  %1937 = vmatprep.subr.mxu0 %v3532_v21  ;;  %v3538_v21 = vld [vmem:[#allocation75_spill] sm:$0xff] }
  0x67   :  { %1964 = vmatprep.subr.mxu1 %v2260_v17  ;;  %1938 = vmatpush3.msra.mxu0 %v3533_v42  ;;  %v3539_v42 = vld [vmem:[#allocation78_spill] sm:$0xff] }
  0x68   :  { %1965 = vmatpush3.msra.mxu1 %v2282_v22  ;;  %1939 = vmatprep.subr.mxu0 %v3534_v36  ;;  %v3540_v36 = vld [vmem:[#allocation84_spill] sm:$0xff] }
  0x69   :  { %1966 = vmatprep.subr.mxu1 %v2288_v24  ;;  %1940 = vmatpush3.msra.mxu0 %v3535_v55  ;;  %v3541_v55 = vld [vmem:[#allocation86_spill] sm:$0xff] }
  0x6a   :  { %1967 = vmatpush3.msra.mxu1 %v3498_v53  ;;  %1941 = vmatprep.subr.mxu0 %v3536_v38  ;;  %v3564_v38 = vld [vmem:[#allocation72_spill] sm:$0xff] }
  0x6b   :  { %1968 = vmatprep.subr.mxu1 %v3500_v28  ;;  %1942 = vmatpush3.msra.mxu0 %v3537_v43  ;;  %v3560_v43 = vld [vmem:[#allocation56_spill] sm:$0xff] }
  0x6c   :  { %1969 = vmatpush3.msra.mxu1 %v3501_v7  ;;  %1943 = vmatprep.subr.mxu0 %v3538_v21  ;;  %v3542_v21 = vld [vmem:[#allocation92_spill] sm:$0xff] }
  0x6d   :  { %1970 = vmatprep.subr.mxu1 %v3502_v46  ;;  %1944 = vmatpush3.msra.mxu0 %v3539_v42  ;;  %v3555_v42 = vld [vmem:[#allocation40_spill] sm:$0xff] }
  0x6e   :  { %1971 = vmatpush3.msra.mxu1 %v3503_v48  ;;  %1945 = vmatprep.subr.mxu0 %v3540_v36 }
  0x6f   :  { %1972 = vmatprep.subr.mxu1 %v3504_v56  ;;  %1946 = vmatpush3.msra.mxu0 %v3541_v55  ;;  %v3547_v55 = vld [vmem:[#allocation15_spill] sm:$0xff] }
  0x70   :  { %1973 = vmatpush3.msra.mxu1 %v3505_v18  ;;  %1947 = vmatprep.subr.mxu0 %v2819_v62  ;;  %v3543_v62 = vld [vmem:[#allocation76_spill] sm:$0xff] }
  0x71   :  { %1974 = vmatprep.subr.mxu1 %v3506_v14  ;;  %1948 = vmatpush3.msra.mxu0 %v2828_v26 }
  0x72   :  { %1975 = vmatpush3.msra.mxu1 %v3507_v50  ;;  %1949 = vmatprep.subr.mxu0 %v3542_v21  ;;  %v3546_v21 = vld [vmem:[#allocation71_spill] sm:$0xff] }
  0x73   :  { %1976 = vmatprep.subr.mxu1 %v3508_v58  ;;  %1950 = vmatpush3.msra.mxu0 %v2838_v29  ;;  %v3545_v29 = vld [vmem:[#allocation12_spill] sm:$0xff]  ;;  %v907_v26 = vmul.f32 %v3546_v21, %v3546_v21  ;;  %v3551_v21 = vld [vmem:[#allocation22_spill] sm:$0xff] }
  0x74   :  { %1977 = vmatpush3.msra.mxu1 %v3509_v63  ;;  %1951 = vmatprep.subr.mxu0 %v2866_v12 }
  0x75   :  { %1978 = vmatprep.subr.mxu1 %v3510_v61  ;;  %1952 = vmatpush3.msra.mxu0 %v2873_v2  ;;  %v3544_v2 = vld [vmem:[#allocation67_spill] sm:$0xff]  ;;  %v3049_v36 = vand.u32 4294901760, %v907_v26 }
  0x76   :  { %796 = vmatprep.mubr.f32.mxu0 %v3543_v62  ;;  %1979 = vmatpush3.msra.mxu1 %v2557_v52  ;;  %v908_v12 = vmul.f32 %v3544_v2, %v3544_v2 }
  0x77   :  { %798 = vmatmul.mubr.f32.vlgmr.msra.gmra.mxu0 %v2753_v6  ;;  %1980 = vmatprep.subr.mxu1 %v2578_v37 }
  0x78   :  { %1991 = vmatprep.subr.mxu0 %v2225_v3  ;;  %1981 = vmatpush3.msra.mxu1 %v2597_v34  ;;  %v3043_v2 = vand.u32 4294901760, %v908_v12 }
  0x79   :  { %1992 = vmatpush3.msra.mxu0 %v2227_v4  ;;  %1982 = vmatprep.subr.mxu1 %v3513_v39 }
  0x7a   :  { %1993 = vmatprep.subr.mxu0 %v2229_v5  ;;  %1983 = vmatpush3.msra.mxu1 %v3515_v44 }
  0x7b   :  { %1994 = vmatpush3.msra.mxu0 %v2240_v9  ;;  %1984 = vmatprep.subr.mxu1 %v3517_v33 }
  0x7c   :  { %1995 = vmatprep.subr.mxu0 %v2242_v10  ;;  %1985 = vmatpush3.msra.mxu1 %v2675_v41 }
  0x7d   :  { %1996 = vmatpush3.msra.mxu0 %v2244_v11  ;;  %1986 = vmatprep.subr.mxu1 %v2696_v13 }
  0x7e   :  { %1997 = vmatprep.subr.mxu0 %v2256_v15  ;;  %1987 = vmatpush3.msra.mxu1 %v2727_v30 }
  0x7f   :  { %900 = vmatprep.mubr.f32.mxu1 %v3543_v62  ;;  %1998 = vmatpush3.msra.mxu0 %v2258_v16  ;;  %v3548_v62 = vld [vmem:[#allocation16_spill] sm:$0xff] }
  0x80   :  { %902 = vmatmul.mubr.f32.vlgmr.msra.gmra.mxu1 %v2753_v6  ;;  %1999 = vmatprep.subr.mxu0 %v2260_v17  ;;  %v3549_v6 = vld [vmem:[#allocation18_spill] sm:$0xff] }
  0x81   :  { %2026 = vmatprep.subr.mxu1 %v3545_v29  ;;  %2000 = vmatpush3.msra.mxu0 %v2282_v22  ;;  %v3550_v29 = vld [vmem:[#allocation20_spill] sm:$0xff] }
  0x82   :  { %2027 = vmatpush3.msra.mxu1 %v3547_v55  ;;  %2001 = vmatprep.subr.mxu0 %v2288_v24  ;;  %v3552_v55 = vld [vmem:[#allocation25_spill] sm:$0xff] }
  0x83   :  { %2028 = vmatprep.subr.mxu1 %v3548_v62  ;;  %2002 = vmatpush3.msra.mxu0 %v3498_v53  ;;  %v3553_v62 = vld [vmem:[#allocation34_spill] sm:$0xff] }
  0x84   :  { %2029 = vmatpush3.msra.mxu1 %v3549_v6  ;;  %2003 = vmatprep.subr.mxu0 %v3500_v28  ;;  %v3058_v6 = vsub.f32 %v908_v12, %v3043_v2 }
  0x85   :  { %2030 = vmatprep.subr.mxu1 %v3550_v29  ;;  %2004 = vmatpush3.msra.mxu0 %v3501_v7  ;;  %v3554_v29 = vld [vmem:[#allocation37_spill] sm:$0xff] }
  0x86   :  { %2031 = vmatpush3.msra.mxu1 %v3551_v21  ;;  %2005 = vmatprep.subr.mxu0 %v3502_v46  ;;  %v3065_v21 = vsub.f32 %v907_v26, %v3049_v36  ;;  %v3398_v12 = vand.u32 4294901760, %v3058_v6 }
  0x87   :  { %2032 = vmatprep.subr.mxu1 %v3552_v55  ;;  %2006 = vmatpush3.msra.mxu0 %v3503_v48  ;;  %v3556_v55 = vld [vmem:[#allocation43_spill] sm:$0xff] }
  0x88   :  { %2033 = vmatpush3.msra.mxu1 %v3553_v62  ;;  %2007 = vmatprep.subr.mxu0 %v3504_v56  ;;  %v3557_v62 = vld [vmem:[#allocation45_spill] sm:$0xff]  ;;  %v3399_v26 = vand.u32 4294901760, %v3065_v21 }
  0x89   :  { %2034 = vmatprep.subr.mxu1 %v3554_v29  ;;  %2008 = vmatpush3.msra.mxu0 %v3505_v18  ;;  %v3558_v29 = vld [vmem:[#allocation47_spill] sm:$0xff] }
  0x8a   :  { %2035 = vmatpush3.msra.mxu1 %v3555_v42  ;;  %2009 = vmatprep.subr.mxu0 %v3506_v14  ;;  %v3559_v42 = vld [vmem:[#allocation50_spill] sm:$0xff] }
  0x8b   :  { %2036 = vmatprep.subr.mxu1 %v3556_v55  ;;  %2010 = vmatpush3.msra.mxu0 %v3507_v50  ;;  %v3561_v55 = vld [vmem:[#allocation60_spill] sm:$0xff] }
  0x8c   :  { %2037 = vmatpush3.msra.mxu1 %v3557_v62  ;;  %2011 = vmatprep.subr.mxu0 %v3508_v58  ;;  %v1008_v62 = vsub.f32 %v3058_v6, %v3398_v12 }
  0x8d   :  { %2038 = vmatprep.subr.mxu1 %v3558_v29  ;;  %2012 = vmatpush3.msra.mxu0 %v3509_v63  ;;  %v3562_v29 = vld [vmem:[#allocation65_spill] sm:$0xff] }
  0x8e   :  { %2039 = vmatpush3.msra.mxu1 %v3559_v42  ;;  %2013 = vmatprep.subr.mxu0 %v3510_v61  ;;  %v3563_v42 = vld [vmem:[#allocation68_spill] sm:$0xff]  ;;  %v1009_v12 = vand.u32 4294901760, %v1008_v62  ;;  %v3593_v62 = vld [vmem:[#allocation3_spill] sm:$0xff] }
  0x8f   :  { %2040 = vmatprep.subr.mxu1 %v3560_v43  ;;  %2014 = vmatpush3.msra.mxu0 %v2557_v52  ;;  %v1014_v43 = vsub.f32 %v3065_v21, %v3399_v26  ;;  %v3571_v26 = vld [vmem:[#allocation2_spill] sm:$0xff] }
  0x90   :  { %2041 = vmatpush3.msra.mxu1 %v3561_v55  ;;  %2015 = vmatprep.subr.mxu0 %v2578_v37  ;;  %v3565_v55 = vld [vmem:[#allocation74_spill] sm:$0xff] }
  0x91   :  { %2042 = vmatprep.subr.mxu1 %v3562_v29  ;;  %2016 = vmatpush3.msra.mxu0 %v2597_v34  ;;  %v3566_v29 = vld [vmem:[#allocation77_spill] sm:$0xff]  ;;  %v1015_v47 = vand.u32 4294901760, %v1014_v43  ;;  %v3594_v43 = vld [vmem:[#allocation6_spill] sm:$0xff] }
  0x92   :  { %2043 = vmatpush3.msra.mxu1 %v3563_v42  ;;  %2017 = vmatprep.subr.mxu0 %v3513_v39  ;;  %v3567_v42 = vld [vmem:[#allocation79_spill] sm:$0xff] }
  0x93   :  { %2044 = vmatprep.subr.mxu1 %v3564_v38  ;;  %2018 = vmatpush3.msra.mxu0 %v3515_v44  ;;  %v3569_v38 = vld [vmem:[#allocation83_spill] sm:$0xff] }
  0x94   :  { %2045 = vmatpush3.msra.mxu1 %v3565_v55  ;;  %2019 = vmatprep.subr.mxu0 %v3517_v33  ;;  %v3570_v55 = vld [vmem:[#allocation93_spill] sm:$0xff] }
  0x95   :  { %2046 = vmatprep.subr.mxu1 %v3566_v29  ;;  %2020 = vmatpush3.msra.mxu0 %v2675_v41  ;;  %v3595_v29 = vld [vmem:[#allocation7_spill] sm:$0xff] }
  0x96   :  { %2047 = vmatpush3.msra.mxu1 %v3567_v42  ;;  %2021 = vmatprep.subr.mxu0 %v2696_v13  ;;  %v3596_v42 = vld [vmem:[#allocation9_spill] sm:$0xff] }
  0x97   :  { %2048 = vmatprep.subr.mxu1 %v3568_v54  ;;  %2022 = vmatpush3.msra.mxu0 %v2727_v30  ;;  %v3583_v54 = vld [vmem:[#allocation70_spill] sm:$0xff] }
  0x98   :  { %2049 = vmatpush3.msra.mxu1 %v3569_v38  ;;  %1010 = vmatprep.mubr.f32.mxu0 %v1009_v12  ;;  %v3591_v12 = vld [vmem:[#allocation95_spill] sm:$0xff] }
  0x99   :  { %2050 = vmatprep.subr.mxu1 %v3570_v55  ;;  %2061 = vmatprep.subr.mxu0 %v3571_v26  ;;  %v3592_v26 = vld [vmem:[#allocation96_spill] sm:$0xff]  ;;  %v3597_v38 = vld [vmem:[#allocation11_spill] sm:$0xff]  ;;  %v3598_v55 = vld [vmem:[#allocation13_spill] sm:$0xff] }
  0x9a   :  { %1016 = vmatmul.mubr.f32.vlgmr.msra.gmra.mxu0 %v1015_v47  ;;  %2051 = vmatpush3.msra.mxu1 %v2840_v1  ;;  %v3578_v47 = vld [vmem:[#allocation51_spill] sm:$0xff]  ;;  %v3585_v1 = vld [vmem:[#allocation80_spill] sm:$0xff] }
  0x9b   :  { %2062 = vmatpush3.msra.mxu0 %v2285_v23  ;;  %2052 = vmatprep.subr.mxu1 %v2851_v57  ;;  %v3572_v23 = vld [vmem:[#allocation29_spill] sm:$0xff]  ;;  %v3586_v57 = vld [vmem:[#allocation82_spill] sm:$0xff] }
  0x9c   :  { %2063 = vmatprep.subr.mxu0 %v2291_v25  ;;  %2053 = vmatpush3.msra.mxu1 %v2861_v27  ;;  %v3573_v25 = vld [vmem:[#allocation32_spill] sm:$0xff]  ;;  %v3584_v27 = vld [vmem:[#allocation73_spill] sm:$0xff] }
  0x9d   :  { %2064 = vmatpush3.msra.mxu0 %v2316_v31  ;;  %2054 = vmatprep.subr.mxu1 %v2863_v60  ;;  %v3574_v31 = vld [vmem:[#allocation36_spill] sm:$0xff]  ;;  %v3587_v60 = vld [vmem:[#allocation85_spill] sm:$0xff] }
  0x9e   :  { %2065 = vmatprep.subr.mxu0 %v2329_v35  ;;  %2055 = vmatpush3.msra.mxu1 %v2870_v51  ;;  %v3575_v35 = vld [vmem:[#allocation42_spill] sm:$0xff]  ;;  %v3588_v51 = vld [vmem:[#allocation87_spill] sm:$0xff] }
  0x9f   :  { %2066 = vmatpush3.msra.mxu0 %v2346_v40  ;;  %2056 = vmatprep.subr.mxu1 %v2885_v49  ;;  %v3576_v40 = vld [vmem:[#allocation44_spill] sm:$0xff] }
  0xa0   :  { %2067 = vmatprep.subr.mxu0 %v2360_v45  ;;  %2057 = vmatpush3.msra.mxu1 %v2888_v20  ;;  %v3577_v45 = vld [vmem:[#allocation49_spill] sm:$0xff]  ;;  %v3589_v49 = vld [vmem:[#allocation88_spill] sm:$0xff]  ;;  %v3590_v20 = vld [vmem:[#allocation90_spill] sm:$0xff] }
  0xa1   :  { %1246 = vmatprep.mubr.f32.mxu1 %v3043_v2  ;;  %2068 = vmatpush3.msra.mxu0 %v2405_v59  ;;  %v3579_v59 = vld [vmem:[#allocation54_spill] sm:$0xff] }
  0xa2   :  { %1248 = vmatmul.mubr.f32.vlgmr.msra.gmra.mxu1 %v3049_v36  ;;  %2069 = vmatprep.subr.mxu0 %v2422_v0  ;;  %v3580_v0 = vld [vmem:[#allocation58_spill] sm:$0xff] }
  0xa3   :  { %2096 = vmatprep.subr.mxu1 %v2225_v3  ;;  %2070 = vmatpush3.msra.mxu0 %v2441_v8  ;;  %v3581_v8 = vld [vmem:[#allocation62_spill] sm:$0xff] }
  0xa4   :  { %2097 = vmatpush3.msra.mxu1 %v2227_v4  ;;  %2071 = vmatprep.subr.mxu0 %v2460_v19  ;;  %v3582_v19 = vld [vmem:[#allocation64_spill] sm:$0xff] }
  0xa5   :  { %2098 = vmatprep.subr.mxu1 %v2229_v5  ;;  %2072 = vmatpush3.msra.mxu0 %v3572_v23  ;;  %v3599_v23 = vld [vmem:[#allocation17_spill] sm:$0xff] }
  0xa6   :  { %2099 = vmatpush3.msra.mxu1 %v2240_v9  ;;  %2073 = vmatprep.subr.mxu0 %v3573_v25  ;;  %v3600_v25 = vand.u32 4294901760, %v3058_v6 }
  0xa7   :  { %2100 = vmatprep.subr.mxu1 %v2242_v10  ;;  %2074 = vmatpush3.msra.mxu0 %v3574_v31  ;;  %v3601_v31 = vand.u32 4294901760, %v3065_v21 }
  0xa8   :  { %2101 = vmatpush3.msra.mxu1 %v2244_v11  ;;  %2075 = vmatprep.subr.mxu0 %v3575_v35  ;;  %v3602_v35 = vld [vmem:[#allocation26_spill] sm:$0xff] }
  0xa9   :  { %2102 = vmatprep.subr.mxu1 %v2256_v15  ;;  %2076 = vmatpush3.msra.mxu0 %v3576_v40  ;;  %v3603_v40 = vld [vmem:[#allocation28_spill] sm:$0xff] }
  0xaa   :  { %2103 = vmatpush3.msra.mxu1 %v2258_v16  ;;  %2077 = vmatprep.subr.mxu0 %v3577_v45  ;;  %v3604_v45 = vld [vmem:[#allocation31_spill] sm:$0xff] }
  0xab   :  { %2104 = vmatprep.subr.mxu1 %v2260_v17  ;;  %2078 = vmatpush3.msra.mxu0 %v3578_v47  ;;  %v3605_v47 = vld [vmem:[#allocation35_spill] sm:$0xff] }
  0xac   :  { %2105 = vmatpush3.msra.mxu1 %v2282_v22  ;;  %2079 = vmatprep.subr.mxu0 %v3579_v59 }
  0xad   :  { %2106 = vmatprep.subr.mxu1 %v2288_v24  ;;  %2080 = vmatpush3.msra.mxu0 %v3580_v0 }
  0xae   :  { %2107 = vmatpush3.msra.mxu1 %v3498_v53  ;;  %2081 = vmatprep.subr.mxu0 %v3581_v8 }
  0xaf   :  { %2108 = vmatprep.subr.mxu1 %v3500_v28  ;;  %2082 = vmatpush3.msra.mxu0 %v3582_v19 }
  0xb0   :  { %2109 = vmatpush3.msra.mxu1 %v3501_v7  ;;  %2083 = vmatprep.subr.mxu0 %v3583_v54 }
  0xb1   :  { %2110 = vmatprep.subr.mxu1 %v3502_v46  ;;  %2084 = vmatpush3.msra.mxu0 %v3584_v27 }
  0xb2   :  { %2111 = vmatpush3.msra.mxu1 %v3503_v48  ;;  %2085 = vmatprep.subr.mxu0 %v3585_v1 }
  0xb3   :  { %2112 = vmatprep.subr.mxu1 %v3504_v56  ;;  %2086 = vmatpush3.msra.mxu0 %v3586_v57 }
  0xb4   :  { %2113 = vmatpush3.msra.mxu1 %v3505_v18  ;;  %2087 = vmatprep.subr.mxu0 %v3587_v60 }
  0xb5   :  { %2114 = vmatprep.subr.mxu1 %v3506_v14  ;;  %2088 = vmatpush3.msra.mxu0 %v3588_v51 }
  0xb6   :  { %2115 = vmatpush3.msra.mxu1 %v3507_v50  ;;  %2089 = vmatprep.subr.mxu0 %v3589_v49 }
  0xb7   :  { %2116 = vmatprep.subr.mxu1 %v3508_v58  ;;  %2090 = vmatpush3.msra.mxu0 %v3590_v20 }
  0xb8   :  { %2117 = vmatpush3.msra.mxu1 %v3509_v63  ;;  %2091 = vmatprep.subr.mxu0 %v3591_v12 }
  0xb9   :  { %2118 = vmatprep.subr.mxu1 %v3510_v61  ;;  %2092 = vmatpush3.msra.mxu0 %v3592_v26 }
  0xba   :  { %1383 = vmatprep.mubr.f32.mxu0 %v3058_v6  ;;  %2119 = vmatpush3.msra.mxu1 %v2557_v52  ;;  %v3607_v6 = vld [vmem:[#allocation41_spill] sm:$0xff] }
  0xbb   :  { %1386 = vmatmul.mubr.f32.vlgmr.msra.gmra.mxu0 %v3065_v21  ;;  %2120 = vmatprep.subr.mxu1 %v2578_v37 }
  0xbc   :  { %2131 = vmatprep.subr.mxu0 %v3593_v62  ;;  %2121 = vmatpush3.msra.mxu1 %v2597_v34 }
  0xbd   :  { %2132 = vmatpush3.msra.mxu0 %v3594_v43  ;;  %2122 = vmatprep.subr.mxu1 %v3513_v39 }
  0xbe   :  { %2133 = vmatprep.subr.mxu0 %v3595_v29  ;;  %2123 = vmatpush3.msra.mxu1 %v3515_v44 }
  0xbf   :  { %2134 = vmatpush3.msra.mxu0 %v3596_v42  ;;  %2124 = vmatprep.subr.mxu1 %v3517_v33 }
  0xc0   :  { %2135 = vmatprep.subr.mxu0 %v3597_v38  ;;  %2125 = vmatpush3.msra.mxu1 %v2675_v41 }
  0xc1   :  { %2136 = vmatpush3.msra.mxu0 %v3598_v55  ;;  %2126 = vmatprep.subr.mxu1 %v2696_v13 }
  0xc2   :  { %2137 = vmatprep.subr.mxu0 %v3599_v23  ;;  %2127 = vmatpush3.msra.mxu1 %v2727_v30 }
  0xc3   :  { %1490 = vmatprep.mubr.f32.mxu1 %v3600_v25  ;;  %2138 = vmatpush3.msra.mxu0 %v3522_v32  ;;  %v3606_v32 = vld [vmem:[#allocation38_spill] sm:$0xff] }
  0xc4   :  { %1494 = vmatmul.mubr.f32.vlgmr.msra.gmra.mxu1 %v3601_v31  ;;  %2139 = vmatprep.subr.mxu0 %v3602_v35 }
  0xc5   :  { %2166 = vmatprep.subr.mxu1 %v2225_v3  ;;  %2140 = vmatpush3.msra.mxu0 %v3603_v40  ;;  %v3608_v3 = vld [vmem:[#allocation46_spill] sm:$0xff] }
  0xc6   :  { %2167 = vmatpush3.msra.mxu1 %v2227_v4  ;;  %2141 = vmatprep.subr.mxu0 %v3604_v45  ;;  %v3609_v4 = vld [vmem:[#allocation48_spill] sm:$0xff] }
  0xc7   :  { %2168 = vmatprep.subr.mxu1 %v2229_v5  ;;  %2142 = vmatpush3.msra.mxu0 %v3605_v47  ;;  %v3610_v5 = vld [vmem:[#allocation53_spill] sm:$0xff] }
  0xc8   :  { %2169 = vmatpush3.msra.mxu1 %v2240_v9  ;;  %2143 = vmatprep.subr.mxu0 %v3606_v32  ;;  %v3611_v9 = vld [vmem:[#allocation57_spill] sm:$0xff] }
  0xc9   :  { %2170 = vmatprep.subr.mxu1 %v2242_v10  ;;  %2144 = vmatpush3.msra.mxu0 %v3607_v6  ;;  %v3612_v10 = vld [vmem:[#allocation61_spill] sm:$0xff] }
  0xca   :  { %2171 = vmatpush3.msra.mxu1 %v2244_v11  ;;  %2145 = vmatprep.subr.mxu0 %v3608_v3  ;;  %v3613_v11 = vld [vmem:[#allocation63_spill] sm:$0xff] }
  0xcb   :  { %2172 = vmatprep.subr.mxu1 %v2256_v15  ;;  %2146 = vmatpush3.msra.mxu0 %v3609_v4  ;;  %v3614_v15 = vld [vmem:[#allocation66_spill] sm:$0xff] }
  0xcc   :  { %2173 = vmatpush3.msra.mxu1 %v2258_v16  ;;  %2147 = vmatprep.subr.mxu0 %v3610_v5  ;;  %v3615_v16 = vld [vmem:[#allocation69_spill] sm:$0xff] }
  0xcd   :  { %2174 = vmatprep.subr.mxu1 %v2260_v17  ;;  %2148 = vmatpush3.msra.mxu0 %v3611_v9  ;;  %v3616_v17 = vld [vmem:[#allocation75_spill] sm:$0xff] }
  0xce   :  { %2175 = vmatpush3.msra.mxu1 %v2282_v22  ;;  %2149 = vmatprep.subr.mxu0 %v3612_v10  ;;  %v3617_v22 = vld [vmem:[#allocation78_spill] sm:$0xff] }
  0xcf   :  { %2176 = vmatprep.subr.mxu1 %v2288_v24  ;;  %2150 = vmatpush3.msra.mxu0 %v3613_v11  ;;  %v3618_v24 = vld [vmem:[#allocation84_spill] sm:$0xff] }
  0xd0   :  { %2177 = vmatpush3.msra.mxu1 %v3498_v53  ;;  %2151 = vmatprep.subr.mxu0 %v3614_v15  ;;  %v3619_v53 = vld [vmem:[#allocation86_spill] sm:$0xff] }
  0xd1   :  { %2178 = vmatprep.subr.mxu1 %v3500_v28  ;;  %2152 = vmatpush3.msra.mxu0 %v3615_v16  ;;  %v3620_v28 = vld [vmem:[#allocation89_spill] sm:$0xff] }
  0xd2   :  { %2179 = vmatpush3.msra.mxu1 %v3501_v7  ;;  %2153 = vmatprep.subr.mxu0 %v3616_v17  ;;  %v3621_v7 = vld [vmem:[#allocation91_spill] sm:$0xff] }
  0xd3   :  { %2180 = vmatprep.subr.mxu1 %v3502_v46  ;;  %2154 = vmatpush3.msra.mxu0 %v3617_v22  ;;  %v3622_v46 = vld [vmem:[#allocation92_spill] sm:$0xff] }
  0xd4   :  { %2181 = vmatpush3.msra.mxu1 %v3503_v48  ;;  %2155 = vmatprep.subr.mxu0 %v3618_v24  ;;  %v3623_v48 = vld [vmem:[#allocation94_spill] sm:$0xff] }
  0xd5   :  { %2182 = vmatprep.subr.mxu1 %v3504_v56  ;;  %2156 = vmatpush3.msra.mxu0 %v3619_v53  ;;  %v3624_v56 = vld [vmem:[#allocation97_spill] sm:$0xff] }
  0xd6   :  { %2183 = vmatpush3.msra.mxu1 %v3505_v18  ;;  %2157 = vmatprep.subr.mxu0 %v3620_v28  ;;  %v3625_v18 = vld [vmem:[#allocation98_spill] sm:$0xff] }
  0xd7   :  { %2184 = vmatprep.subr.mxu1 %v3506_v14  ;;  %2158 = vmatpush3.msra.mxu0 %v3621_v7 }
  0xd8   :  { %2185 = vmatpush3.msra.mxu1 %v3507_v50  ;;  %2159 = vmatprep.subr.mxu0 %v3622_v46 }
  0xd9   :  { %2186 = vmatprep.subr.mxu1 %v3508_v58  ;;  %2160 = vmatpush3.msra.mxu0 %v3623_v48 }
  0xda   :  { %2187 = vmatpush3.msra.mxu1 %v3509_v63  ;;  %2161 = vmatprep.subr.mxu0 %v3624_v56 }
  0xdb   :  { %2188 = vmatprep.subr.mxu1 %v3510_v61  ;;  %2162 = vmatpush3.msra.mxu0 %v3625_v18 }
  0xdc   :  { %1660 = vmatprep.mubr.f32.mxu0 %v3043_v2  ;;  %2189 = vmatpush3.msra.mxu1 %v2557_v52 }
  0xdd   :  { %1662 = vmatmul.mubr.f32.vlgmr.msra.gmra.mxu0 %v3049_v36  ;;  %2190 = vmatprep.subr.mxu1 %v2578_v37 }
  0xde   :  { %2191 = vmatpush3.msra.mxu1 %v2597_v34  ;;  %1764 = vmatprep.mubr.f32.mxu1 %v3043_v2 }
  0xdf   :  { %2192 = vmatprep.subr.mxu1 %v3513_v39 }
  0xe0   :  { %2193 = vmatpush3.msra.mxu1 %v3515_v44 }
  0xe1   :  { %2194 = vmatprep.subr.mxu1 %v3517_v33 }
  0xe2   :  { %2195 = vmatpush3.msra.mxu1 %v2675_v41 }
  0xe3   :  { %2196 = vmatprep.subr.mxu1 %v2696_v13 }
  0xe4   :  { %2197 = vmatpush3.msra.mxu1 %v2727_v30 }
  0xe5   :  { %1766 = vmatmul.mubr.f32.vlgmr.msra.gmra.mxu1 %v3049_v36 }
  0xf4   :  { %v1813_v50 = vpop.f32.mrf.mxu0 }
  0xf6   :  { %v1814_v52 = vpop.f32.mrf.mxu0 }
  0xf7   :  { %v1815_v8 = vadd.f32 %v1814_v52, %v1813_v50 }
  0xfd   :  { %v1848_v37 = vpop.f32.mrf.mxu1 }
  0xff   :  { %v1849_v14 = vpop.f32.mrf.mxu1 }
 0x100   :  { %v1850_v0 = vadd.f32 %v1849_v14, %v1848_v37 }
 0x102   :  { %v386_v27 = vadd.f32 %v1850_v0, %v1815_v8 }
 0x115   :  { %v1883_v34 = vpop.f32.mrf.mxu0 }
 0x117   :  { %v1884_v61 = vpop.f32.mrf.mxu0 }
 0x118   :  { %v1885_v36 = vadd.f32 %v1884_v61, %v1883_v34 }
 0x11a   :  { %v524_v60 = vadd.f32 %v1885_v36, %v386_v27 }
 0x11e   :  { %v1918_v58 = vpop.f32.mrf.mxu1 }
 0x120   :  { %v1919_v39 = vpop.f32.mrf.mxu1 }
 0x121   :  { %v1920_v1 = vadd.f32 %v1919_v39, %v1918_v58 }
 0x123   :  { %v632_v12 = vadd.f32 %v1920_v1, %v524_v60 }
 0x137   :  { %v1953_v63 = vpop.f32.mrf.mxu0 }
 0x139   :  { %v1954_v44 = vpop.f32.mrf.mxu0 }
 0x13a   :  { %v1955_v51 = vadd.f32 %v1954_v44, %v1953_v63 }
 0x13c   :  { %v800_v42 = vadd.f32 %v1955_v51, %v632_v12 }
 0x140   :  { %v1988_v2 = vpop.f32.mrf.mxu1 }
 0x142   :  { %v1989_v21 = vpop.f32.mrf.mxu1 }
 0x143   :  { %v1990_v26 = vadd.f32 %v1989_v21, %v1988_v2 }
 0x145   :  { %v904_v23 = vadd.f32 %v1990_v26, %v800_v42 }
 0x147   :  { %v1771_v47 = vmul.f32 0.0030864198, %v904_v23 }
 0x149   :  { %v1773_v4 = vmul.f32 %v1771_v47, %v1771_v47 }
 0x15a   :  { %v2023_v33 = vpop.f32.mrf.mxu0 }
 0x15c   :  { %v2024_v41 = vpop.f32.mrf.mxu0 }
 0x15d   :  { %v2025_v62 = vadd.f32 %v2024_v41, %v2023_v33 }
 0x162   :  { %v2058_v59 = vpop.f32.mrf.mxu1 }
 0x164   :  { %v2059_v30 = vpop.f32.mrf.mxu1 }
 0x165   :  { %v2060_v49 = vadd.f32 %v2059_v30, %v2058_v59 }
 0x167   :  { %v1250_v38 = vadd.f32 %v2060_v49, %v2025_v62 }
 0x17b   :  { %v2093_v13 = vpop.f32.mrf.mxu0 }
 0x17d   :  { %v2094_v19 = vpop.f32.mrf.mxu0 }
 0x17e   :  { %v2095_v43 = vadd.f32 %v2094_v19, %v2093_v13 }
 0x180   :  { %v1388_v25 = vadd.f32 %v2095_v43, %v1250_v38 }
 0x184   :  { %v2128_v54 = vpop.f32.mrf.mxu1 }
 0x186   :  { %v2129_v20 = vpop.f32.mrf.mxu1 }
 0x187   :  { %v2130_v55 = vadd.f32 %v2129_v20, %v2128_v54 }
 0x189   :  { %v1496_v40 = vadd.f32 %v2130_v55, %v1388_v25 }
 0x19d   :  { %v2163_v57 = vpop.f32.mrf.mxu0 }
 0x19f   :  { %v2164_v29 = vpop.f32.mrf.mxu0 }
 0x1a0   :  { %v2165_v31 = vadd.f32 %v2164_v29, %v2163_v57 }
 0x1a2   :  { %v1664_v32 = vadd.f32 %v2165_v31, %v1496_v40 }
 0x1a5   :  { %v2198_v35 = vpop.f32.mrf.mxu1 }
 0x1a7   :  { %v2199_v45 = vpop.f32.mrf.mxu1 }
 0x1a8   :  { %v2200_v6 = vadd.f32 %v2199_v45, %v2198_v35 }
 0x1aa   :  { %v1768_v3 = vadd.f32 %v2200_v6, %v1664_v32 }
 0x1ac   :  { %v1772_v5 = vmul.f32 0.0030864198, %v1768_v3 }
 0x1ae   :  { %v1774_v9 = vsub.f32 %v1772_v5, %v1773_v4 }
 0x1b0   :  { %1776 = vst.msk [vmem:[%s3255_s2] sm:$0xff] %vm1775_vm0, %v1774_v9 }

</bundles_post_ra>
